<compile_context>
chip_gen: v5e
topology: v5e:2x2
jax: 0.10.0
libtpu: 0.0.40
codegen_flags: <defaults>
</compile_context>

<pallas_src>
import jax
import jax.numpy as jnp
from jax.experimental import pallas as pl
from jax.experimental.pallas import tpu as pltpu


def _question_flow_kernel(q_ref, o_ref):
    t, l, d = q_ref.shape

    # First half of the output: the questions themselves (identity copy).
    o_ref[:, :, :d] = q_ref[...]

    # Second half: exclusive prefix mean along the leading axis.
    # Row 0 is all zeros (matches the torch.zeros initialization).
    o_ref[0, :, d:] = jnp.zeros((l, d), dtype=o_ref.dtype)

    # Running sum of q[0 .. i-1]; T is small and static, so unroll in Python.
    acc = q_ref[0].astype(jnp.float32)
    for i in range(1, t):
        o_ref[i, :, d:] = (acc * (1.0 / float(i))).astype(o_ref.dtype)
        acc = acc + q_ref[i].astype(jnp.float32)


def question_flow_forward(questions: jax.Array) -> jax.Array:
    """Pallas equivalent of QuestionFlowLayer.forward."""
    t, l, d = questions.shape
    return pl.pallas_call(
        _question_flow_kernel,
        out_shape=jax.ShapeDtypeStruct((t, l, 2 * d), questions.dtype),
        # Gridless call: whole arrays live in VMEM, no grid-step machinery.
        in_specs=[pl.BlockSpec(memory_space=pltpu.MemorySpace.VMEM)],
        out_specs=pl.BlockSpec(memory_space=pltpu.MemorySpace.VMEM),
    )(questions)


def _question_flow_ref(q: jax.Array) -> jax.Array:
    """Pure-JAX reference matching the PyTorch forward."""
    t = q.shape[0]
    csum = jnp.cumsum(q.astype(jnp.float32), axis=0)
    shifted = jnp.concatenate([jnp.zeros_like(csum[:1]), csum[:-1]], axis=0)
    denom = jnp.arange(t, dtype=jnp.float32).reshape(t, 1, 1)
    avg = jnp.where(denom > 0, shifted / jnp.maximum(denom, 1.0), 0.0)
    return jnp.concatenate([q, avg.astype(q.dtype)], axis=-1)


if __name__ == "__main__":
    key = jax.random.PRNGKey(0)
    # (turns, max_len, d_model): small, lane-dense (d_model multiple of 128).
    T, L, D = 8, 16, 128
    questions = jax.random.normal(key, (T, L, D), dtype=jnp.float32)

    out = jax.block_until_ready(question_flow_forward(questions))
    ref = jax.block_until_ready(_question_flow_ref(questions))

    assert out.shape == (T, L, 2 * D) and out.dtype == questions.dtype
    assert jnp.allclose(out, ref, atol=1e-5, rtol=1e-5)

    print("KERNEL_OK")
</pallas_src>

<mosaic_0001>
module attributes {stable_mosaic.version = 11 : i64} {
  func.func @_question_flow_kernel(%arg0: memref<8x16x128xf32, #tpu.memory_space<vmem>>, %arg1: memref<8x16x256xf32, #tpu.memory_space<vmem>>) attributes {dimension_semantics = [], scalar_prefetch = 0 : i64, scratch_operands = 0 : i64, tpu.core_type = #tpu.core_type<tc>} {
    %c0 = arith.constant 0 : index
    %c0_0 = arith.constant 0 : index
    %c0_1 = arith.constant 0 : index
    %0 = vector.load %arg0[%c0, %c0_0, %c0_1] : memref<8x16x128xf32, #tpu.memory_space<vmem>>, vector<8x16x128xf32>
    %c0_2 = arith.constant 0 : index
    %c0_3 = arith.constant 0 : index
    %c0_4 = arith.constant 0 : index
    %1 = vector.load %arg1[%c0_2, %c0_3, %c0_4] : memref<8x16x256xf32, #tpu.memory_space<vmem>>, vector<8x16x128xf32>
    tpu.vector_store %arg1[%c0_2, %c0_3, %c0_4], %0 {strides = array<i32>} : memref<8x16x256xf32, #tpu.memory_space<vmem>>, vector<8x16x128xf32>,
    %cst = arith.constant 0.000000e+00 : f32
    %2 = vector.broadcast %cst : f32 to vector<16x128xf32>
    %c0_5 = arith.constant 0 : index
    %c0_6 = arith.constant 0 : index
    %c128 = arith.constant 128 : index
    %3 = vector.load %arg1[%c0_5, %c0_6, %c128] : memref<8x16x256xf32, #tpu.memory_space<vmem>>, vector<1x16x128xf32>
    %4 = vector.shape_cast %3 : vector<1x16x128xf32> to vector<16x128xf32>
    %5 = vector.shape_cast %2 : vector<16x128xf32> to vector<1x16x128xf32>
    tpu.vector_store %arg1[%c0_5, %c0_6, %c128], %5 {strides = array<i32>} : memref<8x16x256xf32, #tpu.memory_space<vmem>>, vector<1x16x128xf32>,
    %c0_7 = arith.constant 0 : index
    %c0_8 = arith.constant 0 : index
    %c0_9 = arith.constant 0 : index
    %6 = vector.load %arg0[%c0_7, %c0_8, %c0_9] : memref<8x16x128xf32, #tpu.memory_space<vmem>>, vector<1x16x128xf32>
    %7 = vector.shape_cast %6 : vector<1x16x128xf32> to vector<16x128xf32>
    %cst_10 = arith.constant 1.000000e+00 : f32
    %8 = vector.broadcast %cst_10 : f32 to vector<16x128xf32>
    %9 = arith.mulf %7, %8 : vector<16x128xf32>
    %c1 = arith.constant 1 : index
    %c0_11 = arith.constant 0 : index
    %c128_12 = arith.constant 128 : index
    %10 = vector.load %arg1[%c1, %c0_11, %c128_12] : memref<8x16x256xf32, #tpu.memory_space<vmem>>, vector<1x16x128xf32>
    %11 = vector.shape_cast %10 : vector<1x16x128xf32> to vector<16x128xf32>
    %12 = vector.shape_cast %9 : vector<16x128xf32> to vector<1x16x128xf32>
    tpu.vector_store %arg1[%c1, %c0_11, %c128_12], %12 {strides = array<i32>} : memref<8x16x256xf32, #tpu.memory_space<vmem>>, vector<1x16x128xf32>,
    %c1_13 = arith.constant 1 : index
    %c0_14 = arith.constant 0 : index
    %c0_15 = arith.constant 0 : index
    %13 = vector.load %arg0[%c1_13, %c0_14, %c0_15] : memref<8x16x128xf32, #tpu.memory_space<vmem>>, vector<1x16x128xf32>
    %14 = vector.shape_cast %13 : vector<1x16x128xf32> to vector<16x128xf32>
    %15 = arith.addf %7, %14 : vector<16x128xf32>
    %cst_16 = arith.constant 5.000000e-01 : f32
    %16 = vector.broadcast %cst_16 : f32 to vector<16x128xf32>
    %17 = arith.mulf %15, %16 : vector<16x128xf32>
    %c2 = arith.constant 2 : index
    %c0_17 = arith.constant 0 : index
    %c128_18 = arith.constant 128 : index
    %18 = vector.load %arg1[%c2, %c0_17, %c128_18] : memref<8x16x256xf32, #tpu.memory_space<vmem>>, vector<1x16x128xf32>
    %19 = vector.shape_cast %18 : vector<1x16x128xf32> to vector<16x128xf32>
    %20 = vector.shape_cast %17 : vector<16x128xf32> to vector<1x16x128xf32>
    tpu.vector_store %arg1[%c2, %c0_17, %c128_18], %20 {strides = array<i32>} : memref<8x16x256xf32, #tpu.memory_space<vmem>>, vector<1x16x128xf32>,
    %c2_19 = arith.constant 2 : index
    %c0_20 = arith.constant 0 : index
    %c0_21 = arith.constant 0 : index
    %21 = vector.load %arg0[%c2_19, %c0_20, %c0_21] : memref<8x16x128xf32, #tpu.memory_space<vmem>>, vector<1x16x128xf32>
    %22 = vector.shape_cast %21 : vector<1x16x128xf32> to vector<16x128xf32>
    %23 = arith.addf %15, %22 : vector<16x128xf32>
    %cst_22 = arith.constant 0.333333343 : f32
    %24 = vector.broadcast %cst_22 : f32 to vector<16x128xf32>
    %25 = arith.mulf %23, %24 : vector<16x128xf32>
    %c3 = arith.constant 3 : index
    %c0_23 = arith.constant 0 : index
    %c128_24 = arith.constant 128 : index
    %26 = vector.load %arg1[%c3, %c0_23, %c128_24] : memref<8x16x256xf32, #tpu.memory_space<vmem>>, vector<1x16x128xf32>
    %27 = vector.shape_cast %26 : vector<1x16x128xf32> to vector<16x128xf32>
    %28 = vector.shape_cast %25 : vector<16x128xf32> to vector<1x16x128xf32>
    tpu.vector_store %arg1[%c3, %c0_23, %c128_24], %28 {strides = array<i32>} : memref<8x16x256xf32, #tpu.memory_space<vmem>>, vector<1x16x128xf32>,
    %c3_25 = arith.constant 3 : index
    %c0_26 = arith.constant 0 : index
    %c0_27 = arith.constant 0 : index
    %29 = vector.load %arg0[%c3_25, %c0_26, %c0_27] : memref<8x16x128xf32, #tpu.memory_space<vmem>>, vector<1x16x128xf32>
    %30 = vector.shape_cast %29 : vector<1x16x128xf32> to vector<16x128xf32>
    %31 = arith.addf %23, %30 : vector<16x128xf32>
    %cst_28 = arith.constant 2.500000e-01 : f32
    %32 = vector.broadcast %cst_28 : f32 to vector<16x128xf32>
    %33 = arith.mulf %31, %32 : vector<16x128xf32>
    %c4 = arith.constant 4 : index
    %c0_29 = arith.constant 0 : index
    %c128_30 = arith.constant 128 : index
    %34 = vector.load %arg1[%c4, %c0_29, %c128_30] : memref<8x16x256xf32, #tpu.memory_space<vmem>>, vector<1x16x128xf32>
    %35 = vector.shape_cast %34 : vector<1x16x128xf32> to vector<16x128xf32>
    %36 = vector.shape_cast %33 : vector<16x128xf32> to vector<1x16x128xf32>
    tpu.vector_store %arg1[%c4, %c0_29, %c128_30], %36 {strides = array<i32>} : memref<8x16x256xf32, #tpu.memory_space<vmem>>, vector<1x16x128xf32>,
    %c4_31 = arith.constant 4 : index
    %c0_32 = arith.constant 0 : index
    %c0_33 = arith.constant 0 : index
    %37 = vector.load %arg0[%c4_31, %c0_32, %c0_33] : memref<8x16x128xf32, #tpu.memory_space<vmem>>, vector<1x16x128xf32>
    %38 = vector.shape_cast %37 : vector<1x16x128xf32> to vector<16x128xf32>
    %39 = arith.addf %31, %38 : vector<16x128xf32>
    %cst_34 = arith.constant 2.000000e-01 : f32
    %40 = vector.broadcast %cst_34 : f32 to vector<16x128xf32>
    %41 = arith.mulf %39, %40 : vector<16x128xf32>
    %c5 = arith.constant 5 : index
    %c0_35 = arith.constant 0 : index
    %c128_36 = arith.constant 128 : index
    %42 = vector.load %arg1[%c5, %c0_35, %c128_36] : memref<8x16x256xf32, #tpu.memory_space<vmem>>, vector<1x16x128xf32>
    %43 = vector.shape_cast %42 : vector<1x16x128xf32> to vector<16x128xf32>
    %44 = vector.shape_cast %41 : vector<16x128xf32> to vector<1x16x128xf32>
    tpu.vector_store %arg1[%c5, %c0_35, %c128_36], %44 {strides = array<i32>} : memref<8x16x256xf32, #tpu.memory_space<vmem>>, vector<1x16x128xf32>,
    %c5_37 = arith.constant 5 : index
    %c0_38 = arith.constant 0 : index
    %c0_39 = arith.constant 0 : index
    %45 = vector.load %arg0[%c5_37, %c0_38, %c0_39] : memref<8x16x128xf32, #tpu.memory_space<vmem>>, vector<1x16x128xf32>
    %46 = vector.shape_cast %45 : vector<1x16x128xf32> to vector<16x128xf32>
    %47 = arith.addf %39, %46 : vector<16x128xf32>
    %cst_40 = arith.constant 0.166666672 : f32
    %48 = vector.broadcast %cst_40 : f32 to vector<16x128xf32>
    %49 = arith.mulf %47, %48 : vector<16x128xf32>
    %c6 = arith.constant 6 : index
    %c0_41 = arith.constant 0 : index
    %c128_42 = arith.constant 128 : index
    %50 = vector.load %arg1[%c6, %c0_41, %c128_42] : memref<8x16x256xf32, #tpu.memory_space<vmem>>, vector<1x16x128xf32>
    %51 = vector.shape_cast %50 : vector<1x16x128xf32> to vector<16x128xf32>
    %52 = vector.shape_cast %49 : vector<16x128xf32> to vector<1x16x128xf32>
    tpu.vector_store %arg1[%c6, %c0_41, %c128_42], %52 {strides = array<i32>} : memref<8x16x256xf32, #tpu.memory_space<vmem>>, vector<1x16x128xf32>,
    %c6_43 = arith.constant 6 : index
    %c0_44 = arith.constant 0 : index
    %c0_45 = arith.constant 0 : index
    %53 = vector.load %arg0[%c6_43, %c0_44, %c0_45] : memref<8x16x128xf32, #tpu.memory_space<vmem>>, vector<1x16x128xf32>
    %54 = vector.shape_cast %53 : vector<1x16x128xf32> to vector<16x128xf32>
    %55 = arith.addf %47, %54 : vector<16x128xf32>
    %cst_46 = arith.constant 0.142857149 : f32
    %56 = vector.broadcast %cst_46 : f32 to vector<16x128xf32>
    %57 = arith.mulf %55, %56 : vector<16x128xf32>
    %c7 = arith.constant 7 : index
    %c0_47 = arith.constant 0 : index
    %c128_48 = arith.constant 128 : index
    %58 = vector.load %arg1[%c7, %c0_47, %c128_48] : memref<8x16x256xf32, #tpu.memory_space<vmem>>, vector<1x16x128xf32>
    %59 = vector.shape_cast %58 : vector<1x16x128xf32> to vector<16x128xf32>
    %60 = vector.shape_cast %57 : vector<16x128xf32> to vector<1x16x128xf32>
    tpu.vector_store %arg1[%c7, %c0_47, %c128_48], %60 {strides = array<i32>} : memref<8x16x256xf32, #tpu.memory_space<vmem>>, vector<1x16x128xf32>,
    return
  }
}

</mosaic_0001>

<bundles_post_ra>
// kernel: tpu_custom_call.1
= control target key start
LH: loop header
LB: loop body
LE: loop exit
PB: predicated region body
PF: predicated region fallthrough
CT: control target
= control target key end

     0   :  { %6 = vsyncpa [#allocation3], 0  ;;  %s225_s0 = inlined_call_operand.hbm [shape: f32[8,16,128], index: 0, kind: input, shape index: {}]   ;;  %s226_s1 = inlined_call_operand.hbm [shape: f32[8,16,256], index: 1, kind: output, shape index: {}]  }
   0x1   :  { %7 = vsyncpa [#allocation4], 0  ;;  %s12_s8 = sshll.u32 %s225_s0, 4  ;;  %s202_s9 = smov [#allocation2]   ;;  %s13_s8 = int_to_ptr.hbm [resolvable:$true] %s12_s8 }
   0x2   :  { %s14_s10 = sshll.u32 %s202_s9, 4  ;;  %s203_s11 = smov 128   ;;  %s15_s10 = int_to_ptr.vmem [resolvable:$true] %s14_s10 }
   0x3   :  { %s204_s12 = smov 8  }
   0x4   :  { %20 = dma.hbm_to_vmem [thread:$0]  %s13_s8, 2048, %s15_s10, [#allocation3], %s203_s11, %s203_s11, %s204_s12  }
   0x5   :  { %198 = dma.done.wait [#allocation3], 2048  }
   0x6   :  { %199 = vsyncadd [#allocation3], 4294965248  ;;  %v205_v0 = vmov 0.0   ;;  %v25_v1 = vld [vmem:[#allocation2] sm:$0xff]  ;;  %v26_v2 = vld [vmem:[#allocation2 + $0x8] sm:$0xff]  ;;  %s206_s0 = smov [#allocation5]  }
   0x7   :  { %57 = vst [vmem:[#allocation5 + $0x8] sm:$0xff] %v205_v0  ;;  %v27_v3 = vld [vmem:[#allocation2 + $0x10] sm:$0xff]  ;;  %v28_v4 = vld [vmem:[#allocation2 + $0x18] sm:$0xff]  ;;  %v29_v6 = vld [vmem:[#allocation2 + $0x20] sm:$0xff]  ;;  %s128_s13 = sshll.u32 %s206_s0, 4  ;;  %s130_s16 = sshll.u32 %s226_s1, 4  ;;  %s129_s13 = int_to_ptr.vmem [resolvable:$true] %s128_s13  ;;  %s131_s16 = int_to_ptr.hbm [resolvable:$true] %s130_s16 }
   0x8   :  { %58 = vst [vmem:[#allocation5 + $0x18] sm:$0xff] %v205_v0  ;;  %v67_v5 = vadd.f32 %v27_v3, %v25_v1  ;;  %v68_v7 = vadd.f32 %v28_v4, %v26_v2  ;;  %v30_v8 = vld [vmem:[#allocation2 + $0x28] sm:$0xff]  ;;  %v31_v10 = vld [vmem:[#allocation2 + $0x30] sm:$0xff]  ;;  %v32_v12 = vld [vmem:[#allocation2 + $0x38] sm:$0xff]  ;;  %s207_s17 = smov 256   ;;  %s208_s18 = smov 16  }
   0x9   :  { %41 = vst [vmem:[#allocation5] sm:$0xff] %v25_v1  ;;  %v33_v13 = vld [vmem:[#allocation2 + $0x40] sm:$0xff]  ;;  %v34_v14 = vld [vmem:[#allocation2 + $0x48] sm:$0xff]  ;;  %v35_v16 = vld [vmem:[#allocation2 + $0x50] sm:$0xff] }
   0xa   :  { %42 = vst [vmem:[#allocation5 + $0x10] sm:$0xff] %v26_v2  ;;  %v77_v9 = vadd.f32 %v67_v5, %v29_v6  ;;  %v78_v11 = vadd.f32 %v68_v7, %v30_v8  ;;  %v36_v18 = vld [vmem:[#allocation2 + $0x58] sm:$0xff]  ;;  %v37_v19 = vld [vmem:[#allocation2 + $0x60] sm:$0xff]  ;;  %v39_v20 = vld [vmem:[#allocation2 + $0x70] sm:$0xff]  ;;  %v69_v25 = vmul.f32 0.5, %v67_v5  ;;  %v70_v26 = vmul.f32 0.5, %v68_v7 }
   0xb   :  { %43 = vst [vmem:[#allocation5 + $0x20] sm:$0xff] %v27_v3  ;;  %v38_v21 = vld [vmem:[#allocation2 + $0x68] sm:$0xff]  ;;  %v40_v22 = vld [vmem:[#allocation2 + $0x78] sm:$0xff] }
   0xc   :  { %44 = vst [vmem:[#allocation5 + $0x30] sm:$0xff] %v28_v4  ;;  %v87_v15 = vadd.f32 %v77_v9, %v31_v10  ;;  %v88_v17 = vadd.f32 %v78_v11, %v32_v12  ;;  %v79_v27 = vmul.f32 0.33333334, %v77_v9  ;;  %v80_v29 = vmul.f32 0.33333334, %v78_v11 }
   0xd   :  { %45 = vst [vmem:[#allocation5 + $0x40] sm:$0xff] %v29_v6 }
   0xe   :  { %46 = vst [vmem:[#allocation5 + $0x50] sm:$0xff] %v30_v8  ;;  %v97_v23 = vadd.f32 %v87_v15, %v33_v13  ;;  %v98_v24 = vadd.f32 %v88_v17, %v34_v14  ;;  %v89_v31 = vmul.f32 0.25, %v87_v15  ;;  %v90_v32 = vmul.f32 0.25, %v88_v17 }
   0xf   :  { %47 = vst [vmem:[#allocation5 + $0x60] sm:$0xff] %v31_v10 }
  0x10   :  { %48 = vst [vmem:[#allocation5 + $0x70] sm:$0xff] %v32_v12  ;;  %v107_v28 = vadd.f32 %v97_v23, %v35_v16  ;;  %v108_v30 = vadd.f32 %v98_v24, %v36_v18  ;;  %v99_v33 = vmul.f32 0.2, %v97_v23  ;;  %v100_v35 = vmul.f32 0.2, %v98_v24 }
  0x11   :  { %49 = vst [vmem:[#allocation5 + $0x80] sm:$0xff] %v33_v13 }
  0x12   :  { %50 = vst [vmem:[#allocation5 + $0x90] sm:$0xff] %v34_v14  ;;  %v117_v34 = vadd.f32 %v107_v28, %v37_v19  ;;  %v118_v36 = vadd.f32 %v108_v30, %v38_v21  ;;  %v109_v37 = vmul.f32 0.16666667, %v107_v28  ;;  %v110_v38 = vmul.f32 0.16666667, %v108_v30 }
  0x13   :  { %51 = vst [vmem:[#allocation5 + $0xa0] sm:$0xff] %v35_v16 }
  0x14   :  { %52 = vst [vmem:[#allocation5 + $0xb0] sm:$0xff] %v36_v18  ;;  %v119_v39 = vmul.f32 0.14285715, %v117_v34  ;;  %v120_v40 = vmul.f32 0.14285715, %v118_v36 }
  0x15   :  { %53 = vst [vmem:[#allocation5 + $0xc0] sm:$0xff] %v37_v19 }
  0x16   :  { %54 = vst [vmem:[#allocation5 + $0xd0] sm:$0xff] %v38_v21 }
  0x17   :  { %55 = vst [vmem:[#allocation5 + $0xe0] sm:$0xff] %v39_v20 }
  0x18   :  { %56 = vst [vmem:[#allocation5 + $0xf0] sm:$0xff] %v40_v22 }
  0x19   :  { %62 = vst [vmem:[#allocation5 + $0x28] sm:$0xff] %v25_v1 }
  0x1a   :  { %63 = vst [vmem:[#allocation5 + $0x38] sm:$0xff] %v26_v2 }
  0x1b   :  { %72 = vst [vmem:[#allocation5 + $0x48] sm:$0xff] %v69_v25 }
  0x1c   :  { %73 = vst [vmem:[#allocation5 + $0x58] sm:$0xff] %v70_v26 }
  0x1d   :  { %82 = vst [vmem:[#allocation5 + $0x68] sm:$0xff] %v79_v27 }
  0x1e   :  { %83 = vst [vmem:[#allocation5 + $0x78] sm:$0xff] %v80_v29 }
  0x1f   :  { %92 = vst [vmem:[#allocation5 + $0x88] sm:$0xff] %v89_v31 }
  0x20   :  { %93 = vst [vmem:[#allocation5 + $0x98] sm:$0xff] %v90_v32 }
  0x21   :  { %102 = vst [vmem:[#allocation5 + $0xa8] sm:$0xff] %v99_v33 }
  0x22   :  { %103 = vst [vmem:[#allocation5 + $0xb8] sm:$0xff] %v100_v35 }
  0x23   :  { %112 = vst [vmem:[#allocation5 + $0xc8] sm:$0xff] %v109_v37 }
  0x24   :  { %113 = vst [vmem:[#allocation5 + $0xd8] sm:$0xff] %v110_v38 }
  0x25   :  { %122 = vst [vmem:[#allocation5 + $0xe8] sm:$0xff] %v119_v39 }
  0x26   :  { %123 = vst [vmem:[#allocation5 + $0xf8] sm:$0xff] %v120_v40 }
  0x27   :  { %136 = dma.vmem_to_hbm [thread:$0]  %s129_s13, 4096, %s131_s16, [#allocation4], %s207_s17, %s207_s17, %s208_s18  }
  0x28   :  { %200 = dma.done.wait [#allocation4], 4096  }
  0x29   :  { %201 = vsyncadd [#allocation4], 4294963200 }
  0x2a   :  { %141 = vsyncpa [#allocation3], 1 }
  0x2b   :  { %142 = vsyncpa [#allocation4], 1 }

</bundles_post_ra>
